<compile_context>
chip_gen: v6e
topology: v6e:2x2x1
jax: 0.10.0
libtpu: 0.0.40
codegen_flags: <defaults>
</compile_context>

<pallas_src>
import functools

import numpy as np
import jax
import jax.numpy as jnp
from jax.experimental import pallas as pl
from jax.experimental.pallas import tpu as pltpu

_LANE = 128


def _fa_kernel(factors_ref, z_ref, eps_ref, out_ref, *, compute_dtype):
    # factors_ref: (BB, D, K), z_ref: (BB, K, TN) in producer dtype,
    # eps_ref: (1, N_TOT) f32 (VMEM-resident), out_ref: (BB, D, TN)
    tn = out_ref.shape[-1]
    f = factors_ref[...].astype(compute_dtype)
    zz = z_ref[...].astype(compute_dtype)
    acc = jnp.einsum("bdk,bkn->bdn", f, zz,
                     preferred_element_type=jnp.float32)        # MXU, f32 accumulate
    start = pl.multiple_of(pl.program_id(1) * tn, _LANE)
    eps = eps_ref[:, pl.ds(start, tn)]                           # (1, TN), no per-step DMA
    out_ref[...] = (acc + eps).astype(out_ref.dtype)             # fused VPU add + store


def _tpu_config():
    """Returns (vmem_limit_bytes, block_budget_bytes, vmem_capacity, num_parallel_cores)."""
    vmem_cap = 64 << 20                      # conservative fallback (works everywhere)
    try:
        vmem_cap = int(pltpu.get_tpu_info().vmem_capacity_bytes)
    except Exception:
        pass
    kind = ""
    try:
        kind = jax.devices()[0].device_kind.lower()
    except Exception:
        pass
    # v7x has 2 TensorCores per chip; v4/v5p megacore also shards "parallel"
    # grid axes across 2 cores.  v5e/v6e run the grid serially on one core.
    multi_tc = ("v7" in kind) or ("v4" in kind) or ("v5p" in kind) or vmem_cap <= (64 << 20)
    num_tc = 2 if multi_tc else 1
    vmem_limit = min((vmem_cap * 3) // 4, 96 << 20)    # ~48 MiB on v7x, 96 MiB on v5e/v6e
    block_budget = min(vmem_cap // 5, 28 << 20)        # ~12 MiB on v7x, ~26 MiB on v5e/v6e
    return vmem_limit, block_budget, vmem_cap, num_tc


def _choose_tiles(B, D, K, N, in_bytes, out_bytes, block_budget, num_tc):
    """Pick (BB, TN, grid_n, double-buffered block footprint in bytes)."""
    n128 = pl.cdiv(N, _LANE) * _LANE
    fixed = D * K * in_bytes                        # factors bytes per batch
    per_col = K * in_bytes + D * out_bytes          # z + out bytes per lane column per batch

    def foot(bb, tn):                               # double-buffered in/out block footprint
        return 2 * bb * (fixed + tn * per_col)

    # Largest lane tile (multiple of 128, <= n128) that fits the budget at BB=1.
    # Since z/out are never padded in HBM, overhang of the last tile only costs
    # a little masked MXU/store work, so we simply maximize TN.
    cap = (block_budget // 2 - fixed) // per_col if per_col > 0 else n128
    tn = max(_LANE, min(n128, (cap // _LANE) * _LANE))
    grid_n = pl.cdiv(N, tn)

    # On 2-TC chips make sure the grid supplies >= 2 parallel steps: when B == 1
    # and everything fits in one n tile, split the n axis instead of the batch.
    if num_tc >= 2 and B == 1 and grid_n == 1 and n128 >= 2 * _LANE:
        tn = pl.cdiv(n128 // 2, _LANE) * _LANE
        grid_n = pl.cdiv(N, tn)

    # Largest divisor of B whose block fits the budget; on 2-TC chips keep >= 2
    # total grid steps unless the n axis already provides them.  On 1-TC chips
    # just take the biggest block (the grid is a serial loop there).
    bb = 1
    for d in range(1, B + 1):
        if B % d or foot(d, tn) > block_budget:
            continue
        if num_tc >= 2 and grid_n == 1 and B >= 2 and (B // d) < 2:
            continue
        bb = d
    return bb, tn, grid_n, foot(bb, tn)


def factor_analysis_forward(factors, z, eps, *,
                            compute_dtype=jnp.bfloat16, out_dtype=jnp.float32):
    """factors: [B, D, K], z: [B, K, N], eps: [N] -> out: [B, D, N] (out_dtype)."""
    B, D, K = factors.shape
    assert z.shape[0] == B and z.shape[1] == K
    N = z.shape[2]
    # PyTorch broadcast of epsilon() binds to the LAST axis only when
    # len(noise_cov) == N; guard that assumption explicitly.
    assert eps.shape == (N,), "epsilon length must equal N (last dim of z)"

    in_bytes = max(jnp.dtype(factors.dtype).itemsize, jnp.dtype(z.dtype).itemsize)
    out_bytes = jnp.dtype(out_dtype).itemsize

    vmem_limit, block_budget, vmem_cap, num_tc = _tpu_config()
    BB, TN, grid_n, block_bytes = _choose_tiles(
        B, D, K, N, in_bytes, out_bytes, block_budget, num_tc)
    grid_b = B // BB
    n_tot = grid_n * TN

    # epsilon is tiny (length N): pad/reshape it host-side so the resident
    # (1, n_tot) block can always be sliced in-bounds inside the kernel.
    eps2d = jnp.pad(eps.astype(jnp.float32), (0, n_tot - N)).reshape(1, n_tot)

    # Make sure the chosen blocks (plus resident eps) fit the requested limit
    # (review fix: the BB=1 fallback must actually fit too).
    need = block_bytes + 2 * n_tot * 4 + (2 << 20)
    vmem_limit = int(min(max(vmem_limit, need), max(vmem_cap - (2 << 20), need)))

    kernel = functools.partial(_fa_kernel, compute_dtype=compute_dtype)
    out = pl.pallas_call(
        kernel,
        out_shape=jax.ShapeDtypeStruct((B, D, N), out_dtype),
        grid_spec=pltpu.PrefetchScalarGridSpec(
            num_scalar_prefetch=0,
            grid=(grid_b, grid_n),
            in_specs=[
                pl.BlockSpec((BB, D, K), lambda b, n: (b, 0, 0)),     # factors block
                pl.BlockSpec((BB, K, TN), lambda b, n: (b, 0, n)),    # z block (last tile masked)
                pl.BlockSpec((1, n_tot), lambda b, n: (0, 0)),        # epsilon, VMEM-resident
            ],
            out_specs=pl.BlockSpec((BB, D, TN), lambda b, n: (b, 0, n)),
        ),
        compiler_params=pltpu.CompilerParams(
            dimension_semantics=("parallel", "parallel"),
            vmem_limit_bytes=vmem_limit),
    )(factors, z, eps2d)
    return out


def build_epsilon(noise_prob, noise_cov):
    # epsilon() = stack([noise_prob * sqrt(n**2) for _, n in noise_cov.items()])
    eps = np.stack([noise_prob * np.sqrt(n ** 2) for _, n in noise_cov.items()])
    return jnp.asarray(eps, dtype=jnp.float32)


if __name__ == "__main__":
    # Small shapes consistent with the module; N deliberately not a multiple of
    # 128 to exercise the masked partial-tile path (no wrapper pad/slice).
    B, D, K, N = 2, 16, 32, 200

    key = jax.random.PRNGKey(0)
    k_f, k_z, k_n = jax.random.split(key, 3)

    # Deterministic "parameters" (the module's __init__ takes factors + noise_cov).
    factors = jax.random.normal(k_f, (B, D, K), dtype=jnp.float32)
    z = jax.random.normal(k_z, (B, K, N), dtype=jnp.float32)

    noise_prob = 0.1
    noise_vals = np.asarray(jax.random.normal(k_n, (N,), dtype=jnp.float32))
    noise_cov = {f"model_{i}": float(noise_vals[i]) for i in range(N)}

    eps = build_epsilon(noise_prob, noise_cov)        # shape [N]

    out = factor_analysis_forward(factors, z, eps)
    out = jax.block_until_ready(out)
    assert out.shape == (B, D, N)

    # Reference in plain JAX on bf16-cast inputs (the kernel casts to bf16
    # in-kernel and accumulates in f32), so the comparison is tight.
    f_bf = factors.astype(jnp.bfloat16).astype(jnp.float32)
    z_bf = z.astype(jnp.bfloat16).astype(jnp.float32)
    ref = jnp.einsum("bdk,bkn->bdn", f_bf, z_bf) + eps[None, None, :]
    np.testing.assert_allclose(np.asarray(out), np.asarray(ref), rtol=1e-4, atol=1e-4)

    print("KERNEL_OK")
</pallas_src>

<mosaic_0001>
module attributes {stable_mosaic.version = 11 : i64} {
  func.func @_fa_kernel(%arg0: i32, %arg1: i32, %arg2: memref<1x16x32xf32, #tpu.memory_space<vmem>>, %arg3: memref<1x32x256xf32, #tpu.memory_space<vmem>>, %arg4: memref<1x256xf32, #tpu.memory_space<vmem>>, %arg5: memref<1x16x256xf32, #tpu.memory_space<vmem>>) attributes {dimension_semantics = [#tpu.dimension_semantics<parallel>, #tpu.dimension_semantics<parallel>], iteration_bounds = array<i64: 2, 1>, scalar_prefetch = 0 : i64, scratch_operands = 0 : i64, tpu.core_type = #tpu.core_type<tc>, window_params = [{transform_indices = @transform_0, window_bounds = array<i64: 1, 16, 32>}, {transform_indices = @transform_1, window_bounds = array<i64: 1, 32, 256>}, {pipeline_mode = #tpu.pipeline_mode<synchronous>, transform_indices = @transform_2, window_bounds = array<i64: 1, 256>}, {transform_indices = @transform_3, window_bounds = array<i64: 1, 16, 256>}]} {
    %c0 = arith.constant 0 : index
    %c0_0 = arith.constant 0 : index
    %c0_1 = arith.constant 0 : index
    %0 = vector.load %arg2[%c0, %c0_0, %c0_1] : memref<1x16x32xf32, #tpu.memory_space<vmem>>, vector<1x16x32xf32>
    %1 = arith.truncf %0 : vector<1x16x32xf32> to vector<1x16x32xbf16>
    %c0_2 = arith.constant 0 : index
    %c0_3 = arith.constant 0 : index
    %c0_4 = arith.constant 0 : index
    %2 = vector.load %arg3[%c0_2, %c0_3, %c0_4] : memref<1x32x256xf32, #tpu.memory_space<vmem>>, vector<1x32x256xf32>
    %3 = arith.truncf %2 : vector<1x32x256xf32> to vector<1x32x256xbf16>
    "tpu.trace_start"() <{level = 10 : i32, message = "bdk,bkn->bdn"}> : () -> ()
    %cst = arith.constant dense<0.000000e+00> : vector<1x16x256xf32>
    %4 = tpu.matmul %1, %3, %cst {dimension_numbers = #tpu.dot_dimension_numbers<[2], [1], [1], [2], [0, 0, 0, 1, 1, 2], [0], [0]>} : vector<1x16x32xbf16>, vector<1x32x256xbf16>, vector<1x16x256xf32> -> vector<1x16x256xf32>
    "tpu.trace_stop"() : () -> ()
    %c256_i32 = arith.constant 256 : i32
    %5 = arith.muli %arg1, %c256_i32 : i32
    %6 = tpu.assume_multiple %5, 128 : i32
    %c0_5 = arith.constant 0 : index
    %7 = arith.index_cast %6 : i32 to index
    %8 = vector.load %arg4[%c0_5, %7] : memref<1x256xf32, #tpu.memory_space<vmem>>, vector<1x256xf32>
    %9 = vector.shape_cast %8 : vector<1x256xf32> to vector<1x1x256xf32>
    %10 = vector.broadcast %9 : vector<1x1x256xf32> to vector<1x16x256xf32>
    %11 = arith.addf %4, %10 : vector<1x16x256xf32>
    %c0_6 = arith.constant 0 : index
    %c0_7 = arith.constant 0 : index
    %c0_8 = arith.constant 0 : index
    %12 = vector.load %arg5[%c0_6, %c0_7, %c0_8] : memref<1x16x256xf32, #tpu.memory_space<vmem>>, vector<1x16x256xf32>
    tpu.vector_store %arg5[%c0_6, %c0_7, %c0_8], %11 {strides = array<i32>} : memref<1x16x256xf32, #tpu.memory_space<vmem>>, vector<1x16x256xf32>,
    return
  }
  func.func @transform_0(%arg0: i32, %arg1: i32) -> (i32, i32, i32) {
    %c0_i32 = arith.constant 0 : i32
    %c0_i32_0 = arith.constant 0 : i32
    %c0_i32_1 = arith.constant 0 : i32
    return %arg0, %c0_i32, %c0_i32_0 : i32, i32, i32
  }
  func.func @transform_1(%arg0: i32, %arg1: i32) -> (i32, i32, i32) {
    %c0_i32 = arith.constant 0 : i32
    %c0_i32_0 = arith.constant 0 : i32
    return %arg0, %c0_i32, %arg1 : i32, i32, i32
  }
  func.func @transform_2(%arg0: i32, %arg1: i32) -> (i32, i32) {
    %c0_i32 = arith.constant 0 : i32
    %c0_i32_0 = arith.constant 0 : i32
    %c0_i32_1 = arith.constant 0 : i32
    return %c0_i32, %c0_i32_0 : i32, i32
  }
  func.func @transform_3(%arg0: i32, %arg1: i32) -> (i32, i32, i32) {
    %c0_i32 = arith.constant 0 : i32
    %c0_i32_0 = arith.constant 0 : i32
    return %arg0, %c0_i32, %arg1 : i32, i32, i32
  }
}

</mosaic_0001>

<bundles_post_ra>
// kernel: tpu_custom_call.1
= control target key start
LH: loop header
LB: loop body
LE: loop exit
PB: predicated region body
PF: predicated region fallthrough
CT: control target
= control target key end

     0   :  { %s908_s0 = inlined_call_operand.hbm [shape: f32[2,16,32], index: 0, kind: input, shape index: {}]   ;;  %s909_s1 = inlined_call_operand.hbm [shape: f32[2,32,200], index: 1, kind: input, shape index: {}]   ;;  %s910_s2 = inlined_call_operand.vmem [shape: f32[1,256], index: 2, kind: input, shape index: {}]   ;;  %s911_s3 = inlined_call_operand.hbm [shape: f32[2,16,200], index: 3, kind: output, shape index: {}]  }
   0x1   :  { %912 = sst [smem:[#allocation11_spill]] %s908_s0 }
   0x2   :  { %8 = vsyncpa [#allocation3], 0 }
   0x3   :  { %10 = vsyncpa [#allocation3 + $0x1], 0 }
   0x4   :  { %11 = vsyncpa [#allocation6], 0 }
   0x5   :  { %13 = vsyncpa [#allocation6 + $0x1], 0 }
   0x6   :  { %14 = vsyncpa [#allocation4], 0 }
   0x7   :  { %16 = vsyncpa [#allocation4 + $0x1], 0  ;;  %s728_s12 = smov 0   ;;  %s730_s13 = smov 0  }
   0x8   :  { %s732_s14 = smov 0   ;;  %s734_s15 = smov 0  }
   0x9   :  { %s736_s16 = smov 0   ;;  %s738_s17 = smov 0  }
   0xa LB: > { %s459_s18 = sadd.s32 4294967295, %s696_s17   ;;  %s460_s19 = sadd.s32 4294967294, %s696_s17   ;;  %s696_s17 = sphi %s738_s17, %s22_s17   ;;  %s692_s16 = sphi %s736_s16, %s924_s16   ;;  %s688_s15 = sphi %s734_s15, %s923_s15   ;;  %s684_s14 = sphi %s732_s14, %s922_s14   ;;  %s680_s13 = sphi %s730_s13, %s921_s13   ;;  %s676_s12 = sphi %s728_s12, %s920_s12  }
   0xb   : > { %s34_s20 = sadd.s32 1, %s692_s16  ;;  %s41_s21 = sadd.s32 1, %s684_s14 }
   0xc   : > { %p36_p0 = scmp.ge.s32.totalorder %s34_s20, 2  ;;  %p48_p1 = scmp.ne.s32.totalorder %s684_s14, %s680_s13 }
   0xd   : > { %p49_p2 = scmp.eq.s32.totalorder %s696_s17, 0  ;;  %p54_p3 = scmp.ne.s32.totalorder %s680_s13, %s676_s12 }
   0xe   : > { %s926_s20 = smov (%p36_p0, %s34_s20), 0  ;;  %p55_p5 = scmp.eq.s32.totalorder %s459_s18, 0 }
   0xf   : > { %p769_p4 = por %p49_p2, %p48_p1  ;;  %s38_s23 = ssub.s32 %s692_s16, %s926_s20 }
  0x10   : > { %p129_p6 = scmp.eq.s32.totalorder %s459_s18, 1  ;;  %p39_p7 = scmp.eq.s32.totalorder %s38_s23, 0 }
  0x11   : > { %p775_p8 = por %p55_p5, %p54_p3  ;;  %p135_p10 = scmp.eq.s32.totalorder %s460_s19, 1 }
  0x12   : > { %p779_p9 = por %p129_p6, %p48_p1  ;;  %p462_p12 = scmp.ge.s32.totalorder %s696_s17, 2 }
  0x13   : > { %s784_s26 = scalar_select %p39_p7, %s684_s14, %s41_s21  }
  0x14   : > { %p786_p11 = por %p135_p10, %p54_p3  ;;  %p499_p13 = scmp.lt.s32.totalorder %s696_s17, 2 }
  0x15   : > { %s793_s28 = sand.u32 1, %s684_s14   ;;  %s479_s30 = sshll.u32 %s692_s16, 8 }
  0x16   : > { %s463_s29 = sshll.u32 %s793_s28, 4  ;;  %s917_s0 = sld [smem:[#allocation11_spill]] }
  0x17   : > { %s162_s7 = scalar_lea.vmem [#allocation2], %s463_s29  ;;  %p802_p0 = pnand %p499_p13, %p769_p4 }
  0x18   : > { %s169_s8 = sshll.u32 %s162_s7, 4  ;;  %p469_p1 = scmp.ge.s32.totalorder %s696_s17, 1  ;;  %s170_s8 = int_to_ptr.vmem [resolvable:$true] %s169_s8 }
  0x19   : > { %s159_s10 = scalar_lea.sflag [#allocation3], %s793_s28  ;;  %p558_p2 = pneg %p802_p0 }
  0x1a   : > { %s569_s11 = scalar_lea.vmem %s170_s8, 256  ;;  %s698_s18 = smov [#allocation2]  }
  0x1b   : > { %p570_p3 = scmp.ne.s32.totalorder %s170_s8, %s569_s11  ;;  %s574_s19 = sshll.u32 %s698_s18, 4  ;;  %s575_s19 = int_to_ptr.vmem [resolvable:$false] %s574_s19 }
  0x1c   : > { %s168_s6 = scalar_lea.hbm %s917_s0, %s479_s30  ;;  %s576_s21 = scalar_lea.vmem %s575_s19, 512 }
  0x1d   : > { %p572_p5 = pnand %p570_p3, %p558_p2  ;;  %p577_p4 = scmp.lt.s32.totalorder %s170_s8, %s575_s19 }
  0x1e   : > { %p578_p7 = scmp.lt.s32.totalorder %s576_s21, %s569_s11 }
  0x1f   : > { %p573_p6 = pneg %p572_p5 }
  0x20   : > { %p579_p10 = por %p578_p7, %p577_p4 }
  0x22   : > { %p580_p13 = pnand %p579_p10, %p573_p6 }
  0x24   : > { %583 = shalt.err (!%p580_p13)
}
  0x25   : > { %s699_s22 = smov 128   ;;  %s700_s23 = smov 8  }
  0x26   : > { %491 = dma.hbm_to_vmem [thread:$0]  (!%p802_p0), %s168_s6, 256, %s170_s8, %s159_s10, %s699_s22, %s699_s22, %s700_s23  }
  0x27   : > { %p200_p3 = scmp.lt.s32.totalorder %s696_s17, 3  ;;  %s466_s29 = sshll.u32 %s793_s28, 6 }
  0x28   : > { %s480_s30 = sshll.u32 %s692_s16, 10  ;;  %s183_s18 = scalar_lea.vmem [#allocation5], %s466_s29 }
  0x29   : > { %p820_p5 = pnand %p469_p1, %p200_p3  ;;  %s191_s11 = scalar_lea.hbm %s909_s1, %s480_s30 }
  0x2a   : > { %s192_s19 = sshll.u32 %s183_s18, 4  ;;  %s180_s21 = scalar_lea.sflag [#allocation6], %s793_s28  ;;  %s193_s19 = int_to_ptr.vmem [resolvable:$true] %s192_s19 }
  0x2b   : > { %s597_s0 = scalar_lea.vmem %s193_s19, 1024  ;;  %s701_s6 = smov [#allocation5]  }
  0x2c   : > { %p598_p6 = scmp.ne.s32.totalorder %s193_s19, %s597_s0  ;;  %s602_s8 = sshll.u32 %s701_s6, 4  ;;  %s603_s8 = int_to_ptr.vmem [resolvable:$false] %s602_s8 }
  0x2d   : > { %s604_s10 = scalar_lea.vmem %s603_s8, 2048  ;;  %p605_p1 = scmp.lt.s32.totalorder %s193_s19, %s603_s8 }
  0x2e   : > { %p600_p4 = pnand %p598_p6, %p558_p2  ;;  %p606_p10 = scmp.lt.s32.totalorder %s604_s10, %s597_s0 }
  0x30   : > { %p601_p7 = pneg %p600_p4  ;;  %p607_p13 = por %p606_p10, %p605_p1 }
  0x32   : > { %p608_p3 = pnand %p607_p13, %p601_p7 }
  0x34   : > { %611 = shalt.err (!%p608_p3)
}
  0x35   : > { %s702_s22 = smov 256   ;;  %s703_s23 = smov 16  }
  0x36   : > { %494 = dma.hbm_to_vmem [thread:$0]  (!%p802_p0), %s191_s11, 1024, %s193_s19, %s180_s21, %s702_s22, %s702_s22, %s703_s23  }
  0x37   : > { %204 = sbr.rel (%p820_p5) target bundleno = 290 (0x122), region = 32  ;;  %s836_s28 = sand.u32 (!%p820_p5), 1, %s680_s13  }
  0x38   : > { %s470_s29 = sshll.u32 (!%p820_p5), %s836_s28, 4  ;;  %s207_s30 = scalar_lea.sflag (!%p820_p5), [#allocation3], %s836_s28 }
  0x39   : > { %s210_s0 = scalar_lea.vmem (!%p820_p5), [#allocation2], %s470_s29 }
  0x3c   : > { %663 = dma.done.wait (%p775_p8), %s207_s30, 256  }
  0x3d   : > { %665 = vsyncadd (%p775_p8), %s207_s30, 4294967040  ;;  %s471_s9 = sshll.u32 %s836_s28, 6  ;;  %s216_s4 = scalar_lea.sflag [#allocation6], %s836_s28 }
  0x3e   : > { %s219_s5 = scalar_lea.vmem [#allocation5], %s471_s9 }
  0x3f   : > { %667 = dma.done.wait (%p775_p8), %s216_s4, 1024  }
  0x40   : > { %669 = vsyncadd (%p775_p8), %s216_s4, 4294966272  ;;  %v704_v0 = vmov 0   ;;  %v258_v1 = vld [vmem:[%s219_s5 + $0x28] sm:$0xff]  ;;  %v260_v2 = vld [vmem:[%s219_s5 + $0x38] sm:$0xff]  ;;  %vm281_vm0 = vcmask 261120   ;;  %v271_v16 = vlaneseq  ;;  %s472_s11 = sshll.u32 %s836_s28, 5 }
  0x41   : > { %317 = vmatprep.mubr.bf16.mxu0 %v704_v0  ;;  %v257_v3 = vld [vmem:[%s219_s5 + $0x20] sm:$0xff]  ;;  %v264_v4 = vpack.c.bf16 %v260_v2, %v258_v1  ;;  %v259_v5 = vld [vmem:[%s219_s5 + $0x30] sm:$0xff]  ;;  %v254_v6 = vld [vmem:[%s219_s5 + $0x8] sm:$0xff]  ;;  %s246_s18 = scalar_lea.vmem [#allocation7], %s472_s11  ;;  %s481_s21 = sshll.u32 %s688_s15, 9 }
  0x42   : > { %v256_v7 = vld [vmem:[%s219_s5 + $0x18] sm:$0xff]  ;;  %v263_v8 = vpack.c.bf16 %v259_v5, %v257_v3  ;;  %v253_v10 = vld [vmem:[%s219_s5] sm:$0xff]  ;;  %v255_v11 = vld [vmem:[%s219_s5 + $0x10] sm:$0xff]  ;;  %v272_v17 = vshrl.u32 %v271_v16, 7  ;;  %s348_s19 = sshll.u32 %s246_s18, 4  ;;  %s860_s10 = scalar_lea.hbm %s911_s3, %s481_s21  ;;  %s855_s19 = int_to_ptr.vmem [resolvable:$true] %s348_s19 }
  0x43   : > { %v262_v9 = vpack.c.bf16 %v256_v7, %v254_v6  ;;  %297 = vmatprep.subr.bf16.mxu0 %v264_v4  ;;  %v261_v12 = vpack.c.bf16 %v255_v11, %v253_v10  ;;  %v250_v13 = vld [vmem:[%s210_s0] sm:$0xff]  ;;  %v251_v14 = vld [vmem:[%s210_s0 + $0x8] sm:$0xff]  ;;  %s333_s22 = scalar_lea.sflag [#allocation4], %s836_s28  ;;  %s612_s23 = scalar_lea.vmem %s855_s19, 512 }
  0x44   : > { %298 = vmatpush1.bf16.msra.mxu0 %v263_v8  ;;  %v252_v15 = vpack.c.bf16 %v251_v14, %v250_v13  ;;  %v273_v18 = vsub.s32 0, %v272_v17  ;;  %v269_v19 = vld [vmem:[%s910_s2] sm:$0x3]  ;;  %v277_v20 = vsub.s32 1, %v272_v17  ;;  %p613_p8 = scmp.ne.s32.totalorder %s855_s19, %s612_s23  ;;  %s705_s15 = smov [#allocation7]  }
  0x45   : > { %299 = vmatprep.subr.bf16.mxu0 %v262_v9  ;;  %s616_s29 = sshll.u32 %s705_s15, 4  ;;  %s617_s29 = int_to_ptr.vmem [resolvable:$false] %s616_s29 }
  0x46   : > { %v274_v21 = vrot.slane %v269_v19, %v273_v18  ;;  %v278_v22 = vrot.slane %v269_v19, %v277_v20  ;;  %p614_p0 = pnand %p613_p8, %p779_p9  ;;  %s618_s30 = scalar_lea.vmem %s617_s29, 1024 }
  0x47   : > { %p619_p5 = scmp.lt.s32.totalorder %s855_s19, %s617_s29  ;;  %p620_p6 = scmp.lt.s32.totalorder %s618_s30, %s612_s23 }
  0x48   : > { %300 = vmatpush1.bf16.msra.mxu0 %v261_v12  ;;  %p615_p2 = pneg %p614_p0 }
  0x49   : > { %p621_p4 = por %p620_p6, %p619_p5 }
  0x4b   : > { %473 = vmatmul.mubr.msk.bf16.vlgmr.msra.gmra.mxu0 %vm281_vm0, %v252_v15  ;;  %p622_p7 = pnand %p621_p4, %p615_p2 }
 0x10b   : > { %v319_v23 = vpop.f32.mrf.mxu0 }
 0x10c   : > { %v320_v24 = vadd.f32 %v319_v23, %v274_v21 }
 0x10d   : > { %v321_v25 = vpop.f32.mrf.mxu0 }
 0x10e   : > { %328 = vst [vmem:[%s246_s18] sm:$0xff] %v320_v24  ;;  %v322_v26 = vadd.f32 %v321_v25, %v278_v22 }
 0x10f   : > { %v323_v27 = vpop.f32.mrf.mxu0 }
 0x110   : > { %329 = vst [vmem:[%s246_s18 + $0x8] sm:$0xff] %v322_v26  ;;  %v324_v28 = vadd.f32 %v323_v27, %v274_v21 }
 0x111   : > { %v325_v29 = vpop.f32.mrf.mxu0 }
 0x112   : > { %330 = vst [vmem:[%s246_s18 + $0x10] sm:$0xff] %v324_v28  ;;  %v326_v30 = vadd.f32 %v325_v29, %v278_v22 }
 0x114   : > { %331 = vst [vmem:[%s246_s18 + $0x18] sm:$0xff] %v326_v30 }
 0x115   : > { %625 = shalt.err (!%p622_p7)
}
 0x116   : > { %s626_s0 = scalar_lea.hbm %s860_s10, 512  ;;  %s630_s5 = scalar_lea.hbm %s911_s3, 1024 }
 0x117   : > { %p627_p1 = scmp.ne.s32.totalorder %s860_s10, %s626_s0  ;;  %p631_p3 = scmp.lt.s32.totalorder %s860_s10, %s911_s3 }
 0x118   : > { %p632_p8 = scmp.lt.s32.totalorder %s630_s5, %s626_s0 }
 0x119   : > { %p628_p10 = pnand %p627_p1, %p779_p9 }
 0x11a   : > { %p633_p0 = por %p632_p8, %p631_p3 }
 0x11b   : > { %p629_p13 = pneg %p628_p10 }
 0x11d   : > { %p634_p2 = pnand %p633_p0, %p629_p13 }
 0x11f   : > { %637 = shalt.err (!%p634_p2)
}
 0x120   : > { %s706_s11 = smov 256   ;;  %s707_s18 = smov 16  }
 0x121   : > { %486 = dma.vmem_to_hbm [thread:$0]  (%p779_p9), %s855_s19, 512, %s860_s10, %s333_s22, %s706_s11, %s706_s11, %s707_s18  }
 0x122 PF: > { %s363_s21 = sand.u32 1, %s676_s12   ;;  %p496_p5 = pnand %p462_p12, %p786_p11 }
 0x123   : > { %s364_s6 = scalar_lea.sflag [#allocation4], %s363_s21 }
 0x124   : > { %p497_p6 = pneg %p496_p5 }
 0x126   : > { %671 = dma.done.wait (%p497_p6), %s364_s6, 512  }
 0x127   : > { %673 = vsyncadd (%p497_p6), %s364_s6, 4294966784  ;;  %s22_s17 = sadd.s32 1, %s696_s17   ;;  %s920_s12 = smov %s680_s13 }
 0x128   : > { %p19_p4 = scmp.ge.s32.totalorder %s22_s17, 4   ;;  %s921_s13 = smov %s684_s14 }
 0x129   : > { %s922_s14 = smov %s784_s26  ;;  %s923_s15 = smov %s692_s16 }
 0x12a   : > { %s924_s16 = smov %s926_s20  ;;  %21 = sbr.rel (!%p19_p4) target bundleno = 10 (0xa), region = 91 }
 0x12f   :  { %369 = vsyncpa [#allocation3], 1 }
 0x130   :  { %371 = vsyncpa [#allocation3 + $0x1], 1 }
 0x131   :  { %372 = vsyncpa [#allocation6], 1 }
 0x132   :  { %374 = vsyncpa [#allocation6 + $0x1], 1 }
 0x133   :  { %375 = vsyncpa [#allocation4], 1 }
 0x134   :  { %377 = vsyncpa [#allocation4 + $0x1], 1 }

</bundles_post_ra>
